<compile_context>
chip_gen: v6e
topology: v6e:2x2x1
jax: 0.10.0
libtpu: 0.0.40
codegen_flags: <defaults>
</compile_context>

<pallas_src>
import math
import jax
import jax.numpy as jnp
from jax import lax
from jax.experimental import pallas as pl
from jax.experimental.pallas import tpu as pltpu


def _decode_seq_kernel(x_ref, wx_ref, gib_ref, h0_ref, whh_ref, bhh_ref,
                       wo_ref, bo_ref, out_ref, gi_scr, hs_scr):
    B, H = h0_ref.shape
    TB = x_ref.shape[0]
    T = TB // B

    # --- hoisted input-side projection: gi for every timestep in one matmul ---
    gi_scr[...] = (jnp.dot(x_ref[...], wx_ref[...],
                           preferred_element_type=jnp.float32)
                   + gib_ref[...])                                   # (T*B, 3H)

    whh = whh_ref[...]                                               # (H, 3H)
    bhh = bhh_ref[...]                                               # (1, 3H)
    h = h0_ref[...]                                                  # (B, H)

    # --- serial recurrence: only h @ Whh^T + gate math per step ---------------
    for t in range(T):                                               # static unroll
        gi = gi_scr[pl.ds(t * B, B), :]                              # (B, 3H)
        gh = jnp.dot(h, whh, preferred_element_type=jnp.float32) + bhh
        rz = jax.nn.sigmoid(gi[:, :2 * H] + gh[:, :2 * H])           # (B, 2H) lane-dense
        r = rz[:, :H]
        z = rz[:, H:]
        n = jnp.tanh(gi[:, 2 * H:] + r * gh[:, 2 * H:])
        h = (1.0 - z) * n + z * h
        hs_scr[pl.ds(t * B, B), :] = h

    # --- batched out_layer: one matmul + tanh + one store ---------------------
    out_ref[...] = jnp.tanh(
        jnp.dot(hs_scr[...], wo_ref[...], preferred_element_type=jnp.float32)
        + bo_ref[...])


def decode_seq_pallas(Hi_data, encoder_hidden, context, params):
    """Hi_data: (B, T, Din); encoder_hidden: (L, B, H) with L >= 3; context: (B, H)."""
    B, T, Din = Hi_data.shape
    H = params["We"].shape[0]
    Dout = params["Wo"].shape[0]
    f32 = jnp.float32
    hp = lax.Precision.HIGHEST

    # time-major, flattened rows ordered (t, b) -> t*B + b
    x2 = jnp.transpose(Hi_data, (1, 0, 2)).reshape(T * B, Din).astype(f32)
    h0 = jnp.sum(encoder_hidden[2:], axis=0).astype(f32)              # (B, H)
    ctx = context.astype(f32)                                         # (B, H)

    We_T = params["We"].T                                             # (Din, H)
    Wa1_T = params["Wa"][:, :H].T                                     # (H, H)
    Wa2_T = params["Wa"][:, H:].T                                     # (H, H)
    Wih_T = params["Wih"].T                                           # (H, 3H)
    Whh_T = params["Whh"].T                                           # (H, 3H)
    Wo_T = params["Wo"].T                                             # (H, Dout)

    # Fold the x-path:  gi_x = x @ (We^T · Wa1^T · Wih^T)
    W_x = jnp.dot(jnp.dot(We_T, Wa1_T, precision=hp), Wih_T, precision=hp)   # (Din, 3H)
    # Fold every time-invariant additive term of gi (be, ba, bih, ctx projection)
    comb_const = (jnp.dot(params["be"][None, :], Wa1_T, precision=hp)
                  + jnp.dot(ctx, Wa2_T, precision=hp)
                  + params["ba"][None, :])                            # (B, H)
    gi_bias = jnp.dot(comb_const, Wih_T, precision=hp) + params["bih"][None, :]   # (B, 3H)
    gi_bias_full = jnp.tile(gi_bias, (T, 1)).astype(f32)              # (T*B, 3H)

    bhh = params["bhh"].reshape(1, 3 * H).astype(f32)
    bo = params["bo"].reshape(1, Dout).astype(f32)

    vmem = pl.BlockSpec(memory_space=pltpu.MemorySpace.VMEM)

    out2 = pl.pallas_call(
        _decode_seq_kernel,
        out_shape=jax.ShapeDtypeStruct((T * B, Dout), f32),
        in_specs=[vmem] * 8,
        out_specs=vmem,
        scratch_shapes=[pltpu.VMEM((T * B, 3 * H), f32),   # gi for all timesteps
                        pltpu.VMEM((T * B, H), f32)],      # h history
    )(x2, W_x.astype(f32), gi_bias_full, h0, Whh_T.astype(f32), bhh,
      Wo_T.astype(f32), bo)

    return out2.reshape(T, B, Dout).transpose(1, 0, 2)                # (B, T, Dout)


# ----------------------------- reference (pure JAX) ---------------------------
def decode_seq_reference(Hi_data, encoder_hidden, context, params):
    H = params["We"].shape[0]
    hp = lax.Precision.HIGHEST
    x = jnp.transpose(Hi_data, (1, 0, 2)).astype(jnp.float32)         # (T, B, Din)
    h0 = jnp.sum(encoder_hidden[2:], axis=0).astype(jnp.float32)
    e = jnp.dot(x, params["We"].T, precision=hp) + params["be"]
    ctx_rep = jnp.broadcast_to(context[None], (x.shape[0],) + context.shape)
    comb = (jnp.dot(jnp.concatenate([e, ctx_rep], axis=2), params["Wa"].T,
                    precision=hp) + params["ba"])

    def step(h, xt):
        gi = jnp.dot(xt, params["Wih"].T, precision=hp) + params["bih"]
        gh = jnp.dot(h, params["Whh"].T, precision=hp) + params["bhh"]
        r = jax.nn.sigmoid(gi[:, :H] + gh[:, :H])
        z = jax.nn.sigmoid(gi[:, H:2 * H] + gh[:, H:2 * H])
        n = jnp.tanh(gi[:, 2 * H:] + r * gh[:, 2 * H:])
        hn = (1.0 - z) * n + z * h
        return hn, hn

    _, hs = lax.scan(step, h0, comb)                                  # (T, B, H)
    out = jnp.tanh(jnp.dot(hs, params["Wo"].T, precision=hp) + params["bo"])
    return jnp.transpose(out, (1, 0, 2))


# ----------------------------- deterministic params ---------------------------
def make_params(key, dim_seq_in, rnn_out, dim_out):
    H = rnn_out
    ks = jax.random.split(key, 8)

    def xavier(k, out_f, in_f):
        lim = math.sqrt(6.0 / (in_f + out_f))
        return jax.random.uniform(k, (out_f, in_f), jnp.float32, -lim, lim)

    def gru_u(k, shape):
        lim = 1.0 / math.sqrt(H)
        return jax.random.uniform(k, shape, jnp.float32, -lim, lim)

    return {
        "We": xavier(ks[0], H, dim_seq_in),
        "be": jnp.full((H,), 0.01, jnp.float32),
        "Wa": xavier(ks[1], H, 2 * H),
        "ba": jnp.full((H,), 0.01, jnp.float32),
        "Wih": gru_u(ks[2], (3 * H, H)),
        "bih": gru_u(ks[3], (3 * H,)),
        "Whh": gru_u(ks[4], (3 * H, H)),
        "bhh": gru_u(ks[5], (3 * H,)),
        "Wo": xavier(ks[6], dim_out, H),
        "bo": jnp.full((dim_out,), 0.01, jnp.float32),
    }


if __name__ == "__main__":
    B, T = 2, 8
    dim_seq_in, rnn_out, dim_out = 5, 32, 5
    n_enc_layers = 4  # encoder_hidden[2:] must be non-empty

    key = jax.random.PRNGKey(0)
    k1, k2, k3, k4 = jax.random.split(key, 4)

    Hi_data = jax.random.normal(k1, (B, T, dim_seq_in), jnp.float32)
    encoder_hidden = jax.random.normal(k2, (n_enc_layers, B, rnn_out), jnp.float32)
    context = jax.random.normal(k3, (B, rnn_out), jnp.float32)
    params = make_params(k4, dim_seq_in, rnn_out, dim_out)

    out = decode_seq_pallas(Hi_data, encoder_hidden, context, params)
    out = jax.block_until_ready(out)

    ref = decode_seq_reference(Hi_data, encoder_hidden, context, params)
    assert out.shape == (B, T, dim_out)
    assert jnp.allclose(out, ref, atol=2e-4, rtol=2e-4), "mismatch vs pure-JAX reference"

    print("KERNEL_OK")
</pallas_src>

<mosaic_0001>
module attributes {stable_mosaic.version = 11 : i64} {
  func.func @_decode_seq_kernel(%arg0: memref<16x5xf32, #tpu.memory_space<vmem>>, %arg1: memref<5x96xf32, #tpu.memory_space<vmem>>, %arg2: memref<16x96xf32, #tpu.memory_space<vmem>>, %arg3: memref<2x32xf32, #tpu.memory_space<vmem>>, %arg4: memref<32x96xf32, #tpu.memory_space<vmem>>, %arg5: memref<1x96xf32, #tpu.memory_space<vmem>>, %arg6: memref<32x5xf32, #tpu.memory_space<vmem>>, %arg7: memref<1x5xf32, #tpu.memory_space<vmem>>, %arg8: memref<16x5xf32, #tpu.memory_space<vmem>>, %arg9: memref<16x96xf32, #tpu.memory_space<vmem>>, %arg10: memref<16x32xf32, #tpu.memory_space<vmem>>) attributes {dimension_semantics = [], scalar_prefetch = 0 : i64, scratch_operands = 2 : i64, tpu.core_type = #tpu.core_type<tc>} {
    %c0 = arith.constant 0 : index
    %c0_0 = arith.constant 0 : index
    %0 = vector.load %arg0[%c0, %c0_0] : memref<16x5xf32, #tpu.memory_space<vmem>>, vector<16x5xf32>
    %c0_1 = arith.constant 0 : index
    %c0_2 = arith.constant 0 : index
    %1 = vector.load %arg1[%c0_1, %c0_2] : memref<5x96xf32, #tpu.memory_space<vmem>>, vector<5x96xf32>
    %cst = arith.constant dense<0.000000e+00> : vector<16x96xf32>
    %2 = tpu.matmul %0, %1, %cst {dimension_numbers = #tpu.dot_dimension_numbers<[1], [0], [0], [1], [0, 0, 1, 1], [], []>} : vector<16x5xf32>, vector<5x96xf32>, vector<16x96xf32> -> vector<16x96xf32>
    %c0_3 = arith.constant 0 : index
    %c0_4 = arith.constant 0 : index
    %3 = vector.load %arg2[%c0_3, %c0_4] : memref<16x96xf32, #tpu.memory_space<vmem>>, vector<16x96xf32>
    %4 = arith.addf %2, %3 : vector<16x96xf32>
    %c0_5 = arith.constant 0 : index
    %c0_6 = arith.constant 0 : index
    %5 = vector.load %arg9[%c0_5, %c0_6] : memref<16x96xf32, #tpu.memory_space<vmem>>, vector<16x96xf32>
    tpu.vector_store %arg9[%c0_5, %c0_6], %4 {strides = array<i32>} : memref<16x96xf32, #tpu.memory_space<vmem>>, vector<16x96xf32>,
    %c0_7 = arith.constant 0 : index
    %c0_8 = arith.constant 0 : index
    %6 = vector.load %arg4[%c0_7, %c0_8] : memref<32x96xf32, #tpu.memory_space<vmem>>, vector<32x96xf32>
    %c0_9 = arith.constant 0 : index
    %c0_10 = arith.constant 0 : index
    %7 = vector.load %arg5[%c0_9, %c0_10] : memref<1x96xf32, #tpu.memory_space<vmem>>, vector<1x96xf32>
    %c0_11 = arith.constant 0 : index
    %c0_12 = arith.constant 0 : index
    %8 = vector.load %arg3[%c0_11, %c0_12] : memref<2x32xf32, #tpu.memory_space<vmem>>, vector<2x32xf32>
    %c0_13 = arith.constant 0 : index
    %c0_14 = arith.constant 0 : index
    %9 = vector.load %arg9[%c0_13, %c0_14] : memref<16x96xf32, #tpu.memory_space<vmem>>, vector<2x96xf32>
    %cst_15 = arith.constant dense<0.000000e+00> : vector<2x96xf32>
    %10 = tpu.matmul %8, %6, %cst_15 {dimension_numbers = #tpu.dot_dimension_numbers<[1], [0], [0], [1], [0, 0, 1, 1], [], []>} : vector<2x32xf32>, vector<32x96xf32>, vector<2x96xf32> -> vector<2x96xf32>
    %11 = vector.broadcast %7 : vector<1x96xf32> to vector<2x96xf32>
    %12 = arith.addf %10, %11 : vector<2x96xf32>
    %13 = vector.extract_strided_slice %9 {offsets = [0, 0], sizes = [2, 64], strides = [1, 1]} : vector<2x96xf32> to vector<2x64xf32>
    %14 = vector.extract_strided_slice %12 {offsets = [0, 0], sizes = [2, 64], strides = [1, 1]} : vector<2x96xf32> to vector<2x64xf32>
    %15 = arith.addf %13, %14 : vector<2x64xf32>
    %16 = arith.negf %15 : vector<2x64xf32>
    %17 = math.exp %16 : vector<2x64xf32>
    %cst_16 = arith.constant 1.000000e+00 : f32
    %18 = vector.broadcast %cst_16 : f32 to vector<2x64xf32>
    %19 = arith.addf %18, %17 : vector<2x64xf32>
    %20 = arith.divf %18, %19 : vector<2x64xf32>
    %21 = vector.extract_strided_slice %20 {offsets = [0, 0], sizes = [2, 32], strides = [1, 1]} : vector<2x64xf32> to vector<2x32xf32>
    %22 = vector.extract_strided_slice %20 {offsets = [0, 32], sizes = [2, 32], strides = [1, 1]} : vector<2x64xf32> to vector<2x32xf32>
    %23 = vector.extract_strided_slice %9 {offsets = [0, 64], sizes = [2, 32], strides = [1, 1]} : vector<2x96xf32> to vector<2x32xf32>
    %24 = vector.extract_strided_slice %12 {offsets = [0, 64], sizes = [2, 32], strides = [1, 1]} : vector<2x96xf32> to vector<2x32xf32>
    %25 = arith.mulf %21, %24 : vector<2x32xf32>
    %26 = arith.addf %23, %25 : vector<2x32xf32>
    %27 = math.tanh %26 : vector<2x32xf32>
    %cst_17 = arith.constant 1.000000e+00 : f32
    %28 = vector.broadcast %cst_17 : f32 to vector<2x32xf32>
    %29 = arith.subf %28, %22 : vector<2x32xf32>
    %30 = arith.mulf %29, %27 : vector<2x32xf32>
    %31 = arith.mulf %22, %8 : vector<2x32xf32>
    %32 = arith.addf %30, %31 : vector<2x32xf32>
    %c0_18 = arith.constant 0 : index
    %c0_19 = arith.constant 0 : index
    %33 = vector.load %arg10[%c0_18, %c0_19] : memref<16x32xf32, #tpu.memory_space<vmem>>, vector<2x32xf32>
    tpu.vector_store %arg10[%c0_18, %c0_19], %32 {strides = array<i32>} : memref<16x32xf32, #tpu.memory_space<vmem>>, vector<2x32xf32>,
    %c2 = arith.constant 2 : index
    %c0_20 = arith.constant 0 : index
    %34 = vector.load %arg9[%c2, %c0_20] : memref<16x96xf32, #tpu.memory_space<vmem>>, vector<2x96xf32>
    %cst_21 = arith.constant dense<0.000000e+00> : vector<2x96xf32>
    %35 = tpu.matmul %32, %6, %cst_21 {dimension_numbers = #tpu.dot_dimension_numbers<[1], [0], [0], [1], [0, 0, 1, 1], [], []>} : vector<2x32xf32>, vector<32x96xf32>, vector<2x96xf32> -> vector<2x96xf32>
    %36 = vector.broadcast %7 : vector<1x96xf32> to vector<2x96xf32>
    %37 = arith.addf %35, %36 : vector<2x96xf32>
    %38 = vector.extract_strided_slice %34 {offsets = [0, 0], sizes = [2, 64], strides = [1, 1]} : vector<2x96xf32> to vector<2x64xf32>
    %39 = vector.extract_strided_slice %37 {offsets = [0, 0], sizes = [2, 64], strides = [1, 1]} : vector<2x96xf32> to vector<2x64xf32>
    %40 = arith.addf %38, %39 : vector<2x64xf32>
    %41 = arith.negf %40 : vector<2x64xf32>
    %42 = math.exp %41 : vector<2x64xf32>
    %cst_22 = arith.constant 1.000000e+00 : f32
    %43 = vector.broadcast %cst_22 : f32 to vector<2x64xf32>
    %44 = arith.addf %43, %42 : vector<2x64xf32>
    %45 = arith.divf %43, %44 : vector<2x64xf32>
    %46 = vector.extract_strided_slice %45 {offsets = [0, 0], sizes = [2, 32], strides = [1, 1]} : vector<2x64xf32> to vector<2x32xf32>
    %47 = vector.extract_strided_slice %45 {offsets = [0, 32], sizes = [2, 32], strides = [1, 1]} : vector<2x64xf32> to vector<2x32xf32>
    %48 = vector.extract_strided_slice %34 {offsets = [0, 64], sizes = [2, 32], strides = [1, 1]} : vector<2x96xf32> to vector<2x32xf32>
    %49 = vector.extract_strided_slice %37 {offsets = [0, 64], sizes = [2, 32], strides = [1, 1]} : vector<2x96xf32> to vector<2x32xf32>
    %50 = arith.mulf %46, %49 : vector<2x32xf32>
    %51 = arith.addf %48, %50 : vector<2x32xf32>
    %52 = math.tanh %51 : vector<2x32xf32>
    %cst_23 = arith.constant 1.000000e+00 : f32
    %53 = vector.broadcast %cst_23 : f32 to vector<2x32xf32>
    %54 = arith.subf %53, %47 : vector<2x32xf32>
    %55 = arith.mulf %54, %52 : vector<2x32xf32>
    %56 = arith.mulf %47, %32 : vector<2x32xf32>
    %57 = arith.addf %55, %56 : vector<2x32xf32>
    %c2_24 = arith.constant 2 : index
    %c0_25 = arith.constant 0 : index
    %58 = vector.load %arg10[%c2_24, %c0_25] : memref<16x32xf32, #tpu.memory_space<vmem>>, vector<2x32xf32>
    tpu.vector_store %arg10[%c2_24, %c0_25], %57 {strides = array<i32>} : memref<16x32xf32, #tpu.memory_space<vmem>>, vector<2x32xf32>,
    %c4 = arith.constant 4 : index
    %c0_26 = arith.constant 0 : index
    %59 = vector.load %arg9[%c4, %c0_26] : memref<16x96xf32, #tpu.memory_space<vmem>>, vector<2x96xf32>
    %cst_27 = arith.constant dense<0.000000e+00> : vector<2x96xf32>
    %60 = tpu.matmul %57, %6, %cst_27 {dimension_numbers = #tpu.dot_dimension_numbers<[1], [0], [0], [1], [0, 0, 1, 1], [], []>} : vector<2x32xf32>, vector<32x96xf32>, vector<2x96xf32> -> vector<2x96xf32>
    %61 = vector.broadcast %7 : vector<1x96xf32> to vector<2x96xf32>
    %62 = arith.addf %60, %61 : vector<2x96xf32>
    %63 = vector.extract_strided_slice %59 {offsets = [0, 0], sizes = [2, 64], strides = [1, 1]} : vector<2x96xf32> to vector<2x64xf32>
    %64 = vector.extract_strided_slice %62 {offsets = [0, 0], sizes = [2, 64], strides = [1, 1]} : vector<2x96xf32> to vector<2x64xf32>
    %65 = arith.addf %63, %64 : vector<2x64xf32>
    %66 = arith.negf %65 : vector<2x64xf32>
    %67 = math.exp %66 : vector<2x64xf32>
    %cst_28 = arith.constant 1.000000e+00 : f32
    %68 = vector.broadcast %cst_28 : f32 to vector<2x64xf32>
    %69 = arith.addf %68, %67 : vector<2x64xf32>
    %70 = arith.divf %68, %69 : vector<2x64xf32>
    %71 = vector.extract_strided_slice %70 {offsets = [0, 0], sizes = [2, 32], strides = [1, 1]} : vector<2x64xf32> to vector<2x32xf32>
    %72 = vector.extract_strided_slice %70 {offsets = [0, 32], sizes = [2, 32], strides = [1, 1]} : vector<2x64xf32> to vector<2x32xf32>
    %73 = vector.extract_strided_slice %59 {offsets = [0, 64], sizes = [2, 32], strides = [1, 1]} : vector<2x96xf32> to vector<2x32xf32>
    %74 = vector.extract_strided_slice %62 {offsets = [0, 64], sizes = [2, 32], strides = [1, 1]} : vector<2x96xf32> to vector<2x32xf32>
    %75 = arith.mulf %71, %74 : vector<2x32xf32>
    %76 = arith.addf %73, %75 : vector<2x32xf32>
    %77 = math.tanh %76 : vector<2x32xf32>
    %cst_29 = arith.constant 1.000000e+00 : f32
    %78 = vector.broadcast %cst_29 : f32 to vector<2x32xf32>
    %79 = arith.subf %78, %72 : vector<2x32xf32>
    %80 = arith.mulf %79, %77 : vector<2x32xf32>
    %81 = arith.mulf %72, %57 : vector<2x32xf32>
    %82 = arith.addf %80, %81 : vector<2x32xf32>
    %c4_30 = arith.constant 4 : index
    %c0_31 = arith.constant 0 : index
    %83 = vector.load %arg10[%c4_30, %c0_31] : memref<16x32xf32, #tpu.memory_space<vmem>>, vector<2x32xf32>
    tpu.vector_store %arg10[%c4_30, %c0_31], %82 {strides = array<i32>} : memref<16x32xf32, #tpu.memory_space<vmem>>, vector<2x32xf32>,
    %c6 = arith.constant 6 : index
    %c0_32 = arith.constant 0 : index
    %84 = vector.load %arg9[%c6, %c0_32] : memref<16x96xf32, #tpu.memory_space<vmem>>, vector<2x96xf32>
    %cst_33 = arith.constant dense<0.000000e+00> : vector<2x96xf32>
    %85 = tpu.matmul %82, %6, %cst_33 {dimension_numbers = #tpu.dot_dimension_numbers<[1], [0], [0], [1], [0, 0, 1, 1], [], []>} : vector<2x32xf32>, vector<32x96xf32>, vector<2x96xf32> -> vector<2x96xf32>
    %86 = vector.broadcast %7 : vector<1x96xf32> to vector<2x96xf32>
    %87 = arith.addf %85, %86 : vector<2x96xf32>
    %88 = vector.extract_strided_slice %84 {offsets = [0, 0], sizes = [2, 64], strides = [1, 1]} : vector<2x96xf32> to vector<2x64xf32>
    %89 = vector.extract_strided_slice %87 {offsets = [0, 0], sizes = [2, 64], strides = [1, 1]} : vector<2x96xf32> to vector<2x64xf32>
    %90 = arith.addf %88, %89 : vector<2x64xf32>
    %91 = arith.negf %90 : vector<2x64xf32>
    %92 = math.exp %91 : vector<2x64xf32>
    %cst_34 = arith.constant 1.000000e+00 : f32
    %93 = vector.broadcast %cst_34 : f32 to vector<2x64xf32>
    %94 = arith.addf %93, %92 : vector<2x64xf32>
    %95 = arith.divf %93, %94 : vector<2x64xf32>
    %96 = vector.extract_strided_slice %95 {offsets = [0, 0], sizes = [2, 32], strides = [1, 1]} : vector<2x64xf32> to vector<2x32xf32>
    %97 = vector.extract_strided_slice %95 {offsets = [0, 32], sizes = [2, 32], strides = [1, 1]} : vector<2x64xf32> to vector<2x32xf32>
    %98 = vector.extract_strided_slice %84 {offsets = [0, 64], sizes = [2, 32], strides = [1, 1]} : vector<2x96xf32> to vector<2x32xf32>
    %99 = vector.extract_strided_slice %87 {offsets = [0, 64], sizes = [2, 32], strides = [1, 1]} : vector<2x96xf32> to vector<2x32xf32>
    %100 = arith.mulf %96, %99 : vector<2x32xf32>
    %101 = arith.addf %98, %100 : vector<2x32xf32>
    %102 = math.tanh %101 : vector<2x32xf32>
    %cst_35 = arith.constant 1.000000e+00 : f32
    %103 = vector.broadcast %cst_35 : f32 to vector<2x32xf32>
    %104 = arith.subf %103, %97 : vector<2x32xf32>
    %105 = arith.mulf %104, %102 : vector<2x32xf32>
    %106 = arith.mulf %97, %82 : vector<2x32xf32>
    %107 = arith.addf %105, %106 : vector<2x32xf32>
    %c6_36 = arith.constant 6 : index
    %c0_37 = arith.constant 0 : index
    %108 = vector.load %arg10[%c6_36, %c0_37] : memref<16x32xf32, #tpu.memory_space<vmem>>, vector<2x32xf32>
    tpu.vector_store %arg10[%c6_36, %c0_37], %107 {strides = array<i32>} : memref<16x32xf32, #tpu.memory_space<vmem>>, vector<2x32xf32>,
    %c8 = arith.constant 8 : index
    %c0_38 = arith.constant 0 : index
    %109 = vector.load %arg9[%c8, %c0_38] : memref<16x96xf32, #tpu.memory_space<vmem>>, vector<2x96xf32>
    %cst_39 = arith.constant dense<0.000000e+00> : vector<2x96xf32>
    %110 = tpu.matmul %107, %6, %cst_39 {dimension_numbers = #tpu.dot_dimension_numbers<[1], [0], [0], [1], [0, 0, 1, 1], [], []>} : vector<2x32xf32>, vector<32x96xf32>, vector<2x96xf32> -> vector<2x96xf32>
    %111 = vector.broadcast %7 : vector<1x96xf32> to vector<2x96xf32>
    %112 = arith.addf %110, %111 : vector<2x96xf32>
    %113 = vector.extract_strided_slice %109 {offsets = [0, 0], sizes = [2, 64], strides = [1, 1]} : vector<2x96xf32> to vector<2x64xf32>
    %114 = vector.extract_strided_slice %112 {offsets = [0, 0], sizes = [2, 64], strides = [1, 1]} : vector<2x96xf32> to vector<2x64xf32>
    %115 = arith.addf %113, %114 : vector<2x64xf32>
    %116 = arith.negf %115 : vector<2x64xf32>
    %117 = math.exp %116 : vector<2x64xf32>
    %cst_40 = arith.constant 1.000000e+00 : f32
    %118 = vector.broadcast %cst_40 : f32 to vector<2x64xf32>
    %119 = arith.addf %118, %117 : vector<2x64xf32>
    %120 = arith.divf %118, %119 : vector<2x64xf32>
    %121 = vector.extract_strided_slice %120 {offsets = [0, 0], sizes = [2, 32], strides = [1, 1]} : vector<2x64xf32> to vector<2x32xf32>
    %122 = vector.extract_strided_slice %120 {offsets = [0, 32], sizes = [2, 32], strides = [1, 1]} : vector<2x64xf32> to vector<2x32xf32>
    %123 = vector.extract_strided_slice %109 {offsets = [0, 64], sizes = [2, 32], strides = [1, 1]} : vector<2x96xf32> to vector<2x32xf32>
    %124 = vector.extract_strided_slice %112 {offsets = [0, 64], sizes = [2, 32], strides = [1, 1]} : vector<2x96xf32> to vector<2x32xf32>
    %125 = arith.mulf %121, %124 : vector<2x32xf32>
    %126 = arith.addf %123, %125 : vector<2x32xf32>
    %127 = math.tanh %126 : vector<2x32xf32>
    %cst_41 = arith.constant 1.000000e+00 : f32
    %128 = vector.broadcast %cst_41 : f32 to vector<2x32xf32>
    %129 = arith.subf %128, %122 : vector<2x32xf32>
    %130 = arith.mulf %129, %127 : vector<2x32xf32>
    %131 = arith.mulf %122, %107 : vector<2x32xf32>
    %132 = arith.addf %130, %131 : vector<2x32xf32>
    %c8_42 = arith.constant 8 : index
    %c0_43 = arith.constant 0 : index
    %133 = vector.load %arg10[%c8_42, %c0_43] : memref<16x32xf32, #tpu.memory_space<vmem>>, vector<2x32xf32>
    tpu.vector_store %arg10[%c8_42, %c0_43], %132 {strides = array<i32>} : memref<16x32xf32, #tpu.memory_space<vmem>>, vector<2x32xf32>,
    %c10 = arith.constant 10 : index
    %c0_44 = arith.constant 0 : index
    %134 = vector.load %arg9[%c10, %c0_44] : memref<16x96xf32, #tpu.memory_space<vmem>>, vector<2x96xf32>
    %cst_45 = arith.constant dense<0.000000e+00> : vector<2x96xf32>
    %135 = tpu.matmul %132, %6, %cst_45 {dimension_numbers = #tpu.dot_dimension_numbers<[1], [0], [0], [1], [0, 0, 1, 1], [], []>} : vector<2x32xf32>, vector<32x96xf32>, vector<2x96xf32> -> vector<2x96xf32>
    %136 = vector.broadcast %7 : vector<1x96xf32> to vector<2x96xf32>
    %137 = arith.addf %135, %136 : vector<2x96xf32>
    %138 = vector.extract_strided_slice %134 {offsets = [0, 0], sizes = [2, 64], strides = [1, 1]} : vector<2x96xf32> to vector<2x64xf32>
    %139 = vector.extract_strided_slice %137 {offsets = [0, 0], sizes = [2, 64], strides = [1, 1]} : vector<2x96xf32> to vector<2x64xf32>
    %140 = arith.addf %138, %139 : vector<2x64xf32>
    %141 = arith.negf %140 : vector<2x64xf32>
    %142 = math.exp %141 : vector<2x64xf32>
    %cst_46 = arith.constant 1.000000e+00 : f32
    %143 = vector.broadcast %cst_46 : f32 to vector<2x64xf32>
    %144 = arith.addf %143, %142 : vector<2x64xf32>
    %145 = arith.divf %143, %144 : vector<2x64xf32>
    %146 = vector.extract_strided_slice %145 {offsets = [0, 0], sizes = [2, 32], strides = [1, 1]} : vector<2x64xf32> to vector<2x32xf32>
    %147 = vector.extract_strided_slice %145 {offsets = [0, 32], sizes = [2, 32], strides = [1, 1]} : vector<2x64xf32> to vector<2x32xf32>
    %148 = vector.extract_strided_slice %134 {offsets = [0, 64], sizes = [2, 32], strides = [1, 1]} : vector<2x96xf32> to vector<2x32xf32>
    %149 = vector.extract_strided_slice %137 {offsets = [0, 64], sizes = [2, 32], strides = [1, 1]} : vector<2x96xf32> to vector<2x32xf32>
    %150 = arith.mulf %146, %149 : vector<2x32xf32>
    %151 = arith.addf %148, %150 : vector<2x32xf32>
    %152 = math.tanh %151 : vector<2x32xf32>
    %cst_47 = arith.constant 1.000000e+00 : f32
    %153 = vector.broadcast %cst_47 : f32 to vector<2x32xf32>
    %154 = arith.subf %153, %147 : vector<2x32xf32>
    %155 = arith.mulf %154, %152 : vector<2x32xf32>
    %156 = arith.mulf %147, %132 : vector<2x32xf32>
    %157 = arith.addf %155, %156 : vector<2x32xf32>
    %c10_48 = arith.constant 10 : index
    %c0_49 = arith.constant 0 : index
    %158 = vector.load %arg10[%c10_48, %c0_49] : memref<16x32xf32, #tpu.memory_space<vmem>>, vector<2x32xf32>
    tpu.vector_store %arg10[%c10_48, %c0_49], %157 {strides = array<i32>} : memref<16x32xf32, #tpu.memory_space<vmem>>, vector<2x32xf32>,
    %c12 = arith.constant 12 : index
    %c0_50 = arith.constant 0 : index
    %159 = vector.load %arg9[%c12, %c0_50] : memref<16x96xf32, #tpu.memory_space<vmem>>, vector<2x96xf32>
    %cst_51 = arith.constant dense<0.000000e+00> : vector<2x96xf32>
    %160 = tpu.matmul %157, %6, %cst_51 {dimension_numbers = #tpu.dot_dimension_numbers<[1], [0], [0], [1], [0, 0, 1, 1], [], []>} : vector<2x32xf32>, vector<32x96xf32>, vector<2x96xf32> -> vector<2x96xf32>
    %161 = vector.broadcast %7 : vector<1x96xf32> to vector<2x96xf32>
    %162 = arith.addf %160, %161 : vector<2x96xf32>
    %163 = vector.extract_strided_slice %159 {offsets = [0, 0], sizes = [2, 64], strides = [1, 1]} : vector<2x96xf32> to vector<2x64xf32>
    %164 = vector.extract_strided_slice %162 {offsets = [0, 0], sizes = [2, 64], strides = [1, 1]} : vector<2x96xf32> to vector<2x64xf32>
    %165 = arith.addf %163, %164 : vector<2x64xf32>
    %166 = arith.negf %165 : vector<2x64xf32>
    %167 = math.exp %166 : vector<2x64xf32>
    %cst_52 = arith.constant 1.000000e+00 : f32
    %168 = vector.broadcast %cst_52 : f32 to vector<2x64xf32>
    %169 = arith.addf %168, %167 : vector<2x64xf32>
    %170 = arith.divf %168, %169 : vector<2x64xf32>
    %171 = vector.extract_strided_slice %170 {offsets = [0, 0], sizes = [2, 32], strides = [1, 1]} : vector<2x64xf32> to vector<2x32xf32>
    %172 = vector.extract_strided_slice %170 {offsets = [0, 32], sizes = [2, 32], strides = [1, 1]} : vector<2x64xf32> to vector<2x32xf32>
    %173 = vector.extract_strided_slice %159 {offsets = [0, 64], sizes = [2, 32], strides = [1, 1]} : vector<2x96xf32> to vector<2x32xf32>
    %174 = vector.extract_strided_slice %162 {offsets = [0, 64], sizes = [2, 32], strides = [1, 1]} : vector<2x96xf32> to vector<2x32xf32>
    %175 = arith.mulf %171, %174 : vector<2x32xf32>
    %176 = arith.addf %173, %175 : vector<2x32xf32>
    %177 = math.tanh %176 : vector<2x32xf32>
    %cst_53 = arith.constant 1.000000e+00 : f32
    %178 = vector.broadcast %cst_53 : f32 to vector<2x32xf32>
    %179 = arith.subf %178, %172 : vector<2x32xf32>
    %180 = arith.mulf %179, %177 : vector<2x32xf32>
    %181 = arith.mulf %172, %157 : vector<2x32xf32>
    %182 = arith.addf %180, %181 : vector<2x32xf32>
    %c12_54 = arith.constant 12 : index
    %c0_55 = arith.constant 0 : index
    %183 = vector.load %arg10[%c12_54, %c0_55] : memref<16x32xf32, #tpu.memory_space<vmem>>, vector<2x32xf32>
    tpu.vector_store %arg10[%c12_54, %c0_55], %182 {strides = array<i32>} : memref<16x32xf32, #tpu.memory_space<vmem>>, vector<2x32xf32>,
    %c14 = arith.constant 14 : index
    %c0_56 = arith.constant 0 : index
    %184 = vector.load %arg9[%c14, %c0_56] : memref<16x96xf32, #tpu.memory_space<vmem>>, vector<2x96xf32>
    %cst_57 = arith.constant dense<0.000000e+00> : vector<2x96xf32>
    %185 = tpu.matmul %182, %6, %cst_57 {dimension_numbers = #tpu.dot_dimension_numbers<[1], [0], [0], [1], [0, 0, 1, 1], [], []>} : vector<2x32xf32>, vector<32x96xf32>, vector<2x96xf32> -> vector<2x96xf32>
    %186 = vector.broadcast %7 : vector<1x96xf32> to vector<2x96xf32>
    %187 = arith.addf %185, %186 : vector<2x96xf32>
    %188 = vector.extract_strided_slice %184 {offsets = [0, 0], sizes = [2, 64], strides = [1, 1]} : vector<2x96xf32> to vector<2x64xf32>
    %189 = vector.extract_strided_slice %187 {offsets = [0, 0], sizes = [2, 64], strides = [1, 1]} : vector<2x96xf32> to vector<2x64xf32>
    %190 = arith.addf %188, %189 : vector<2x64xf32>
    %191 = arith.negf %190 : vector<2x64xf32>
    %192 = math.exp %191 : vector<2x64xf32>
    %cst_58 = arith.constant 1.000000e+00 : f32
    %193 = vector.broadcast %cst_58 : f32 to vector<2x64xf32>
    %194 = arith.addf %193, %192 : vector<2x64xf32>
    %195 = arith.divf %193, %194 : vector<2x64xf32>
    %196 = vector.extract_strided_slice %195 {offsets = [0, 0], sizes = [2, 32], strides = [1, 1]} : vector<2x64xf32> to vector<2x32xf32>
    %197 = vector.extract_strided_slice %195 {offsets = [0, 32], sizes = [2, 32], strides = [1, 1]} : vector<2x64xf32> to vector<2x32xf32>
    %198 = vector.extract_strided_slice %184 {offsets = [0, 64], sizes = [2, 32], strides = [1, 1]} : vector<2x96xf32> to vector<2x32xf32>
    %199 = vector.extract_strided_slice %187 {offsets = [0, 64], sizes = [2, 32], strides = [1, 1]} : vector<2x96xf32> to vector<2x32xf32>
    %200 = arith.mulf %196, %199 : vector<2x32xf32>
    %201 = arith.addf %198, %200 : vector<2x32xf32>
    %202 = math.tanh %201 : vector<2x32xf32>
    %cst_59 = arith.constant 1.000000e+00 : f32
    %203 = vector.broadcast %cst_59 : f32 to vector<2x32xf32>
    %204 = arith.subf %203, %197 : vector<2x32xf32>
    %205 = arith.mulf %204, %202 : vector<2x32xf32>
    %206 = arith.mulf %197, %182 : vector<2x32xf32>
    %207 = arith.addf %205, %206 : vector<2x32xf32>
    %c14_60 = arith.constant 14 : index
    %c0_61 = arith.constant 0 : index
    %208 = vector.load %arg10[%c14_60, %c0_61] : memref<16x32xf32, #tpu.memory_space<vmem>>, vector<2x32xf32>
    tpu.vector_store %arg10[%c14_60, %c0_61], %207 {strides = array<i32>} : memref<16x32xf32, #tpu.memory_space<vmem>>, vector<2x32xf32>,
    %c0_62 = arith.constant 0 : index
    %c0_63 = arith.constant 0 : index
    %209 = vector.load %arg10[%c0_62, %c0_63] : memref<16x32xf32, #tpu.memory_space<vmem>>, vector<16x32xf32>
    %c0_64 = arith.constant 0 : index
    %c0_65 = arith.constant 0 : index
    %210 = vector.load %arg6[%c0_64, %c0_65] : memref<32x5xf32, #tpu.memory_space<vmem>>, vector<32x5xf32>
    %cst_66 = arith.constant dense<0.000000e+00> : vector<16x5xf32>
    %211 = tpu.matmul %209, %210, %cst_66 {dimension_numbers = #tpu.dot_dimension_numbers<[1], [0], [0], [1], [0, 0, 1, 1], [], []>} : vector<16x32xf32>, vector<32x5xf32>, vector<16x5xf32> -> vector<16x5xf32>
    %c0_67 = arith.constant 0 : index
    %c0_68 = arith.constant 0 : index
    %212 = vector.load %arg7[%c0_67, %c0_68] : memref<1x5xf32, #tpu.memory_space<vmem>>, vector<1x5xf32>
    %213 = vector.broadcast %212 : vector<1x5xf32> to vector<16x5xf32>
    %214 = arith.addf %211, %213 : vector<16x5xf32>
    %215 = math.tanh %214 : vector<16x5xf32>
    %c0_69 = arith.constant 0 : index
    %c0_70 = arith.constant 0 : index
    %216 = vector.load %arg8[%c0_69, %c0_70] : memref<16x5xf32, #tpu.memory_space<vmem>>, vector<16x5xf32>
    tpu.vector_store %arg8[%c0_69, %c0_70], %215 {strides = array<i32>} : memref<16x5xf32, #tpu.memory_space<vmem>>, vector<16x5xf32>,
    return
  }
}

</mosaic_0001>

<bundles_post_ra>
// kernel: tpu_custom_call.1
= control target key start
LH: loop header
LB: loop body
LE: loop exit
PB: predicated region body
PF: predicated region fallthrough
CT: control target
= control target key end

     0   :  { %vm41_vm0 = vcmask 1044480   ;;  %vm34_vm1 = vcmask 39936   ;;  %v1308_v0 = vmov 0.0   ;;  %vm1309_vm2 = vmmov 0   ;;  %s1310_s23 = smov 64   ;;  %s1564_s1 = inlined_call_operand.vmem [shape: f32[5,96], index: 1, kind: input, shape index: {}]   ;;  %s1565_s4 = inlined_call_operand.vmem [shape: f32[32,96], index: 4, kind: input, shape index: {}]   ;;  %s1566_s0 = inlined_call_operand.vmem [shape: f32[16,5], index: 0, kind: input, shape index: {}]   ;;  %s1567_s3 = inlined_call_operand.vmem [shape: f32[2,32], index: 3, kind: input, shape index: {}]   ;;  %s1568_s2 = inlined_call_operand.vmem [shape: f32[16,96], index: 2, kind: input, shape index: {}]   ;;  %s1569_s5 = inlined_call_operand.vmem [shape: f32[1,96], index: 5, kind: input, shape index: {}]   ;;  %s1570_s6 = inlined_call_operand.vmem [shape: f32[32,5], index: 6, kind: input, shape index: {}]   ;;  %s1571_s7 = inlined_call_operand.vmem [shape: f32[1,5], index: 7, kind: input, shape index: {}]   ;;  %s1572_s8 = inlined_call_operand.vmem [shape: f32[16,5], index: 8, kind: output, shape index: {}]  }
   0x1   :  { %1152 = vmatprep.subr.mxu1 %v1308_v0  ;;  %v31_v1 = vld [vmem:[%s1564_s1] sm:$0x1f]  ;;  %v1365_v2 = vld [vmem:[%s1565_s4 + $0x18] sm:$0xff]  ;;  %1160 = vmatprep.mubr.msk.f32.mxu1 %vm1309_vm2, %v1308_v0  ;;  %v30_v4 = vld [vmem:[%s1566_s0 + $0x8] sm:$0xff]  ;;  %vm136_vm3 = vcmask 261120   ;;  %vm120_vm4 = vcmask 785408  }
   0x2   :  { %v29_v3 = vld [vmem:[%s1566_s0] sm:$0xff]  ;;  %1147 = vmatprep.subr.msk.mxu0 %vm41_vm0, %v31_v1  ;;  %1153 = vmatpush3.msra.mxu1 %v1365_v2  ;;  %v1379_v5 = vld [vmem:[%s1565_s4 + $0x10] sm:$0xff]  ;;  %v1387_v6 = vld [vmem:[%s1565_s4 + $0x8] sm:$0xff]  ;;  %vm243_vm5 = vcmask 254976  }
   0x3   :  { %1148 = vmatpush3.msk.msra.mxu0 %vm41_vm0, %v31_v1  ;;  %1149 = vmatprep.mubr.msk.f32.mxu0 %vm34_vm1, %v29_v3  ;;  %v1395_v7 = vld [vmem:[%s1565_s4] sm:$0xff]  ;;  %v33_v9 = vld [vmem:[%s1568_s2 + $0x8] sm:$0xff] }
   0x4   :  { %1154 = vmatprep.subr.mxu1 %v1308_v0  ;;  %1150 = vmatmul.mubr.msk.f32.vlgmr.msra.gmra.mxu0 %vm34_vm1, %v30_v4  ;;  %v128_v8 = vld [vmem:[%s1567_s3] sm:$0x3] }
   0x5   :  { %1155 = vmatpush3.msra.mxu1 %v1379_v5  ;;  %1163 = vmatprep.subr.mxu0 %v1308_v0  ;;  %v32_v11 = vld [vmem:[%s1568_s2] sm:$0xff]  ;;  %s1311_s2 = smov 96  }
   0x6   :  { %1156 = vmatprep.subr.mxu1 %v1308_v0  ;;  %1164 = vmatpush3.msra.mxu0 %v1365_v2  ;;  %v1434_v15 = vld [vmem:[%s1569_s5] ss:$0 sm:$0xff]  ;;  %s1312_s5 = smov 32  }
   0x7   :  { %1157 = vmatpush3.msra.mxu1 %v1387_v6  ;;  %1165 = vmatprep.subr.mxu0 %v1308_v0 }
   0x8   :  { %1158 = vmatprep.subr.mxu1 %v1308_v0  ;;  %1166 = vmatpush3.msra.mxu0 %v1379_v5 }
   0x9   :  { %1159 = vmatpush3.msra.mxu1 %v1395_v7  ;;  %1167 = vmatprep.subr.mxu0 %v1308_v0 }
   0xa   :  { %1161 = vmatmul.mubr.msk.f32.vlgmr.msra.gmra.mxu1 %vm136_vm3, %v128_v8  ;;  %1168 = vmatpush3.msra.mxu0 %v1387_v6 }
   0xb   :  { %1169 = vmatprep.subr.mxu0 %v1308_v0  ;;  %1171 = vmatprep.mubr.msk.f32.mxu0 %vm1309_vm2, %v1308_v0 }
   0xc   :  { %1170 = vmatpush3.msra.mxu0 %v1395_v7  ;;  %1174 = vmatprep.subr.mxu1 %v1308_v0 }
   0xd   :  { %1175 = vmatpush3.msra.mxu1 %v1365_v2  ;;  %1182 = vmatprep.mubr.msk.f32.mxu1 %vm1309_vm2, %v1308_v0 }
   0xe   :  { %1176 = vmatprep.subr.mxu1 %v1308_v0  ;;  %1185 = vmatprep.subr.mxu0 %v1308_v0 }
   0xf   :  { %1177 = vmatpush3.msra.mxu1 %v1379_v5 }
  0x10   :  { %1178 = vmatprep.subr.mxu1 %v1308_v0 }
  0x11   :  { %1179 = vmatpush3.msra.mxu1 %v1387_v6 }
  0x12   :  { %1180 = vmatprep.subr.mxu1 %v1308_v0 }
  0x13   :  { %1181 = vmatpush3.msra.mxu1 %v1395_v7 }
  0x14   :  { %1196 = vmatprep.subr.mxu1 %v1308_v0 }
  0xc4   :  { %v1151_v10 = vpop.f32.mrf.mxu0 }
  0xc5   :  { %v117_v12 = vadd.f32 %v1151_v10, %v33_v9 }
  0xc6   :  { %v111_v13 = vpop.f32.mrf.mxu0 }
  0xc7   :  { %122 = vst.msk [vmem:[#allocation2 + $0x8] sm:$0xff] %vm120_vm4, %v117_v12  ;;  %v112_v14 = vadd.f32 %v111_v13, %v32_v11 }
  0xc9   :  { %121 = vst.msk [vmem:[#allocation2] sm:$0xff] %vm120_vm4, %v112_v14 }
  0xca   :  { %v206_v16 = vpop.f32.mrf.mxu1 }
  0xcb   :  { %v207_v17 = vadd.f32 %v1434_v15, %v206_v16 }
  0xcc   :  { %v1162_v18 = vpop.f32.mrf.mxu1 }
  0xcd   :  { %218 = vrot.lane.b32.xlu0 %v207_v17, %s1310_s23 }
  0xd0   :  { %v129_v19 = vld [vmem:[#allocation2] sm:$0x3]  ;;  %v245_v40 = vld [vmem:[#allocation2 + $0x2] sm:$0x3]  ;;  %v349_v60 = vld [vmem:[#allocation2 + $0x4] sm:$0x3] }
  0xd1   :  { %v210_v20 = vadd.f32 %v207_v17, %v129_v19 }
  0xd3   :  { %v1080_v21 = vmul.f32 -1.442695, %v210_v20 }
  0xd5   :  { %1256 = vpow2.f32 %v1080_v21 }
  0xe2   :  { %v1257_v22 = vpop.eup %1256 }
  0xe3   :  { %v214_v23 = vadd.f32 1.0, %v1257_v22  ;;  %v453_v22 = vld [vmem:[#allocation2 + $0x6] sm:$0x3] }
  0xe5   :  { %1258 = vrcp.f32 %v214_v23 }
  0xf2   :  { %v1259_v24 = vpop.eup %1258 }
  0xf3   :  { %v228_v31 = vsub.f32 1.0, %v1259_v24 }
 0x13f   :  { %v219_v25 = vpop.permute.xlu0 %218 }
 0x140   :  { %v221_v26 = vmul.f32 %v1259_v24, %v219_v25 }
 0x142   :  { %223 = vrot.lane.b32.xlu0 %v221_v26, %s1310_s23 }
 0x1b4   :  { %v224_v27 = vpop.permute.xlu0 %223 }
 0x1b5   :  { %v226_v28 = vadd.f32 %v224_v27, %v129_v19 }
 0x1b7   :  { %1260 = vtanh.f32 %v226_v28 }
 0x1c4   :  { %v1261_v29 = vpop.eup %1260 }
 0x1c5   :  { %230 = vrot.lane.b32.xlu1 %v1261_v29, %s1311_s2 }
 0x1c9   :  { %234 = vrot.lane.b32.xlu1 %v128_v8, %s1312_s5 }
 0x237   :  { %v231_v30 = vpop.permute.xlu1 %230 }
 0x238   :  { %v233_v33 = vmul.f32 %v231_v30, %v228_v31 }
 0x23b   :  { %v235_v32 = vpop.permute.xlu1 %234 }
 0x23c   :  { %v237_v34 = vmul.f32 %v1259_v24, %v235_v32 }
 0x23e   :  { %v238_v35 = vadd.f32 %v237_v34, %v233_v33 }
 0x240   :  { %240 = vrot.lane.b32.xlu0 %v238_v35, %s1311_s2 }
 0x2b2   :  { %v241_v36 = vpop.permute.xlu0 %240 }
 0x2b3   :  { %244 = vst.msk [vmem:[#allocation3] sm:$0x3] %vm243_vm5, %v241_v36  ;;  %1172 = vmatmul.mubr.msk.f32.vlgmr.msra.gmra.mxu0 %vm136_vm3, %v241_v36 }
 0x2b4   :  { %1186 = vmatpush3.msra.mxu0 %v1365_v2  ;;  %1193 = vmatprep.mubr.msk.f32.mxu0 %vm1309_vm2, %v1308_v0 }
 0x2b5   :  { %1187 = vmatprep.subr.mxu0 %v1308_v0 }
 0x2b6   :  { %1188 = vmatpush3.msra.mxu0 %v1379_v5 }
 0x2b7   :  { %1189 = vmatprep.subr.mxu0 %v1308_v0 }
 0x2b8   :  { %1190 = vmatpush3.msra.mxu0 %v1387_v6 }
 0x2b9   :  { %1191 = vmatprep.subr.mxu0 %v1308_v0 }
 0x2ba   :  { %1192 = vmatpush3.msra.mxu0 %v1395_v7 }
 0x2bb   :  { %1207 = vmatprep.subr.mxu0 %v1308_v0 }
 0x373   :  { %v314_v37 = vpop.f32.mrf.mxu0 }
 0x374   :  { %v315_v38 = vadd.f32 %v1434_v15, %v314_v37 }
 0x375   :  { %v1173_v39 = vpop.f32.mrf.mxu0 }
 0x376   :  { %326 = vrot.lane.b32.xlu1 %v315_v38, %s1310_s23  ;;  %v318_v41 = vadd.f32 %v315_v38, %v245_v40 }
 0x378   :  { %v1082_v42 = vmul.f32 -1.442695, %v318_v41 }
 0x37a   :  { %1262 = vpow2.f32 %v1082_v42  ;;  %v557_v42 = vld [vmem:[#allocation2 + $0x8] sm:$0x3] }
 0x387   :  { %v1263_v43 = vpop.eup %1262 }
 0x388   :  { %v322_v44 = vadd.f32 1.0, %v1263_v43 }
 0x38a   :  { %1264 = vrcp.f32 %v322_v44 }
 0x397   :  { %v1265_v45 = vpop.eup %1264 }
 0x398   :  { %v336_v51 = vsub.f32 1.0, %v1265_v45  ;;  %v342_v53 = vmul.f32 %v1265_v45, %v238_v35 }
 0x3e8   :  { %v327_v46 = vpop.permute.xlu1 %326 }
 0x3e9   :  { %v329_v47 = vmul.f32 %v1265_v45, %v327_v46 }
 0x3eb   :  { %331 = vrot.lane.b32.xlu0 %v329_v47, %s1310_s23 }
 0x45d   :  { %v332_v48 = vpop.permute.xlu0 %331 }
 0x45e   :  { %v334_v49 = vadd.f32 %v332_v48, %v245_v40 }
 0x460   :  { %1266 = vtanh.f32 %v334_v49 }
 0x46d   :  { %v1267_v50 = vpop.eup %1266 }
 0x46e   :  { %338 = vrot.lane.b32.xlu1 %v1267_v50, %s1311_s2 }
 0x4e0   :  { %v339_v52 = vpop.permute.xlu1 %338 }
 0x4e1   :  { %v341_v54 = vmul.f32 %v339_v52, %v336_v51 }
 0x4e3   :  { %v343_v55 = vadd.f32 %v342_v53, %v341_v54 }
 0x4e5   :  { %345 = vrot.lane.b32.xlu0 %v343_v55, %s1311_s2 }
 0x557   :  { %v346_v56 = vpop.permute.xlu0 %345 }
 0x558   :  { %348 = vst.msk [vmem:[#allocation3 + $0x2] sm:$0x3] %vm243_vm5, %v346_v56  ;;  %1183 = vmatmul.mubr.msk.f32.vlgmr.msra.gmra.mxu1 %vm136_vm3, %v346_v56 }
 0x559   :  { %1197 = vmatpush3.msra.mxu1 %v1365_v2  ;;  %1204 = vmatprep.mubr.msk.f32.mxu1 %vm1309_vm2, %v1308_v0 }
 0x55a   :  { %1198 = vmatprep.subr.mxu1 %v1308_v0 }
 0x55b   :  { %1199 = vmatpush3.msra.mxu1 %v1379_v5 }
 0x55c   :  { %1200 = vmatprep.subr.mxu1 %v1308_v0 }
 0x55d   :  { %1201 = vmatpush3.msra.mxu1 %v1387_v6 }
 0x55e   :  { %1202 = vmatprep.subr.mxu1 %v1308_v0 }
 0x55f   :  { %1203 = vmatpush3.msra.mxu1 %v1395_v7 }
 0x560   :  { %1218 = vmatprep.subr.mxu1 %v1308_v0 }
 0x618   :  { %v418_v57 = vpop.f32.mrf.mxu1 }
 0x619   :  { %v419_v58 = vadd.f32 %v1434_v15, %v418_v57 }
 0x61a   :  { %v1184_v59 = vpop.f32.mrf.mxu1 }
 0x61b   :  { %430 = vrot.lane.b32.xlu1 %v419_v58, %s1310_s23  ;;  %v422_v61 = vadd.f32 %v419_v58, %v349_v60 }
 0x61d   :  { %v1084_v62 = vmul.f32 -1.442695, %v422_v61 }
 0x61f   :  { %1268 = vpow2.f32 %v1084_v62 }
 0x62c   :  { %v1269_v63 = vpop.eup %1268 }
 0x62d   :  { %v426_v1 = vadd.f32 1.0, %v1269_v63 }
 0x62f   :  { %1270 = vrcp.f32 %v426_v1 }
 0x63c   :  { %v1271_v3 = vpop.eup %1270 }
 0x63d   :  { %v440_v12 = vsub.f32 1.0, %v1271_v3  ;;  %v446_v14 = vmul.f32 %v1271_v3, %v343_v55 }
 0x68d   :  { %v431_v4 = vpop.permute.xlu1 %430 }
 0x68e   :  { %v433_v8 = vmul.f32 %v1271_v3, %v431_v4 }
 0x690   :  { %435 = vrot.lane.b32.xlu0 %v433_v8, %s1310_s23 }
 0x702   :  { %v436_v9 = vpop.permute.xlu0 %435 }
 0x703   :  { %v438_v10 = vadd.f32 %v436_v9, %v349_v60 }
 0x705   :  { %1272 = vtanh.f32 %v438_v10 }
 0x712   :  { %v1273_v11 = vpop.eup %1272 }
 0x713   :  { %442 = vrot.lane.b32.xlu1 %v1273_v11, %s1311_s2 }
 0x785   :  { %v443_v13 = vpop.permute.xlu1 %442 }
 0x786   :  { %v445_v16 = vmul.f32 %v443_v13, %v440_v12 }
 0x788   :  { %v447_v17 = vadd.f32 %v446_v14, %v445_v16 }
 0x78a   :  { %449 = vrot.lane.b32.xlu0 %v447_v17, %s1311_s2 }
 0x7fc   :  { %v450_v18 = vpop.permute.xlu0 %449 }
 0x7fd   :  { %452 = vst.msk [vmem:[#allocation3 + $0x4] sm:$0x3] %vm243_vm5, %v450_v18  ;;  %1194 = vmatmul.mubr.msk.f32.vlgmr.msra.gmra.mxu0 %vm136_vm3, %v450_v18 }
 0x7fe   :  { %1208 = vmatpush3.msra.mxu0 %v1365_v2  ;;  %1215 = vmatprep.mubr.msk.f32.mxu0 %vm1309_vm2, %v1308_v0 }
 0x7ff   :  { %1209 = vmatprep.subr.mxu0 %v1308_v0 }
 0x800   :  { %1210 = vmatpush3.msra.mxu0 %v1379_v5 }
 0x801   :  { %1211 = vmatprep.subr.mxu0 %v1308_v0 }
 0x802   :  { %1212 = vmatpush3.msra.mxu0 %v1387_v6 }
 0x803   :  { %1213 = vmatprep.subr.mxu0 %v1308_v0 }
 0x804   :  { %1214 = vmatpush3.msra.mxu0 %v1395_v7 }
 0x805   :  { %1229 = vmatprep.subr.mxu0 %v1308_v0 }
 0x8bd   :  { %v522_v19 = vpop.f32.mrf.mxu0 }
 0x8be   :  { %v523_v20 = vadd.f32 %v1434_v15, %v522_v19 }
 0x8bf   :  { %v1195_v21 = vpop.f32.mrf.mxu0 }
 0x8c0   :  { %534 = vrot.lane.b32.xlu1 %v523_v20, %s1310_s23  ;;  %v526_v23 = vadd.f32 %v523_v20, %v453_v22  ;;  %v765_v20 = vld [vmem:[#allocation2 + $0xc] sm:$0x3] }
 0x8c2   :  { %v1086_v24 = vmul.f32 -1.442695, %v526_v23 }
 0x8c4   :  { %1274 = vpow2.f32 %v1086_v24 }
 0x8d1   :  { %v1275_v25 = vpop.eup %1274 }
 0x8d2   :  { %v530_v26 = vadd.f32 1.0, %v1275_v25 }
 0x8d4   :  { %1276 = vrcp.f32 %v530_v26 }
 0x8e1   :  { %v1277_v27 = vpop.eup %1276 }
 0x8e2   :  { %v544_v33 = vsub.f32 1.0, %v1277_v27  ;;  %v550_v35 = vmul.f32 %v1277_v27, %v447_v17 }
 0x932   :  { %v535_v28 = vpop.permute.xlu1 %534 }
 0x933   :  { %v537_v29 = vmul.f32 %v1277_v27, %v535_v28 }
 0x935   :  { %539 = vrot.lane.b32.xlu0 %v537_v29, %s1310_s23 }
 0x9a7   :  { %v540_v30 = vpop.permute.xlu0 %539 }
 0x9a8   :  { %v542_v31 = vadd.f32 %v540_v30, %v453_v22 }
 0x9aa   :  { %1278 = vtanh.f32 %v542_v31 }
 0x9b7   :  { %v1279_v32 = vpop.eup %1278 }
 0x9b8   :  { %546 = vrot.lane.b32.xlu1 %v1279_v32, %s1311_s2 }
 0xa2a   :  { %v547_v34 = vpop.permute.xlu1 %546 }
 0xa2b   :  { %v549_v36 = vmul.f32 %v547_v34, %v544_v33 }
 0xa2d   :  { %v551_v37 = vadd.f32 %v550_v35, %v549_v36 }
 0xa2f   :  { %553 = vrot.lane.b32.xlu0 %v551_v37, %s1311_s2 }
 0xaa1   :  { %v554_v38 = vpop.permute.xlu0 %553 }
 0xaa2   :  { %556 = vst.msk [vmem:[#allocation3 + $0x6] sm:$0x3] %vm243_vm5, %v554_v38  ;;  %1205 = vmatmul.mubr.msk.f32.vlgmr.msra.gmra.mxu1 %vm136_vm3, %v554_v38 }
 0xaa3   :  { %1219 = vmatpush3.msra.mxu1 %v1365_v2  ;;  %1226 = vmatprep.mubr.msk.f32.mxu1 %vm1309_vm2, %v1308_v0 }
 0xaa4   :  { %1220 = vmatprep.subr.mxu1 %v1308_v0 }
 0xaa5   :  { %1221 = vmatpush3.msra.mxu1 %v1379_v5 }
 0xaa6   :  { %1222 = vmatprep.subr.mxu1 %v1308_v0 }
 0xaa7   :  { %1223 = vmatpush3.msra.mxu1 %v1387_v6 }
 0xaa8   :  { %1224 = vmatprep.subr.mxu1 %v1308_v0 }
 0xaa9   :  { %1225 = vmatpush3.msra.mxu1 %v1395_v7  ;;  %v973_v16 = vld [vmem:[#allocation3] sm:$0xff] }
 0xb62   :  { %v626_v39 = vpop.f32.mrf.mxu1 }
 0xb63   :  { %v627_v40 = vadd.f32 %v1434_v15, %v626_v39 }
 0xb64   :  { %v1206_v41 = vpop.f32.mrf.mxu1 }
 0xb65   :  { %638 = vrot.lane.b32.xlu1 %v627_v40, %s1310_s23  ;;  %v630_v43 = vadd.f32 %v627_v40, %v557_v42  ;;  %v869_v40 = vld [vmem:[#allocation2 + $0xe] sm:$0x3] }
 0xb67   :  { %v1088_v44 = vmul.f32 -1.442695, %v630_v43 }
 0xb69   :  { %1280 = vpow2.f32 %v1088_v44 }
 0xb76   :  { %v1281_v45 = vpop.eup %1280 }
 0xb77   :  { %v634_v46 = vadd.f32 1.0, %v1281_v45 }
 0xb79   :  { %1282 = vrcp.f32 %v634_v46 }
 0xb86   :  { %v1283_v47 = vpop.eup %1282 }
 0xb87   :  { %v648_v53 = vsub.f32 1.0, %v1283_v47  ;;  %v654_v55 = vmul.f32 %v1283_v47, %v551_v37 }
 0xbd7   :  { %v639_v48 = vpop.permute.xlu1 %638 }
 0xbd8   :  { %v641_v49 = vmul.f32 %v1283_v47, %v639_v48 }
 0xbda   :  { %643 = vrot.lane.b32.xlu0 %v641_v49, %s1310_s23 }
 0xc4c   :  { %v644_v50 = vpop.permute.xlu0 %643 }
 0xc4d   :  { %v646_v51 = vadd.f32 %v644_v50, %v557_v42 }
 0xc4f   :  { %1284 = vtanh.f32 %v646_v51  ;;  %v977_v51 = vld [vmem:[%s1570_s6 + $0x10] sm:$0xff] }
 0xc5c   :  { %v1285_v52 = vpop.eup %1284 }
 0xc5d   :  { %650 = vrot.lane.b32.xlu1 %v1285_v52, %s1311_s2  ;;  %v976_v52 = vld [vmem:[%s1570_s6 + $0x8] sm:$0xff] }
 0xccf   :  { %v651_v54 = vpop.permute.xlu1 %650 }
 0xcd0   :  { %v653_v56 = vmul.f32 %v651_v54, %v648_v53  ;;  %v975_v53 = vld [vmem:[%s1570_s6] sm:$0xff] }
 0xcd2   :  { %v655_v57 = vadd.f32 %v654_v55, %v653_v56 }
 0xcd4   :  { %657 = vrot.lane.b32.xlu0 %v655_v57, %s1311_s2 }
 0xd46   :  { %v658_v58 = vpop.permute.xlu0 %657 }
 0xd47   :  { %660 = vst.msk [vmem:[#allocation3 + $0x8] sm:$0x3] %vm243_vm5, %v658_v58  ;;  %1216 = vmatmul.mubr.msk.f32.vlgmr.msra.gmra.mxu0 %vm136_vm3, %v658_v58 }
 0xd48   :  { %1230 = vmatpush3.msra.mxu0 %v1365_v2  ;;  %1237 = vmatprep.mubr.msk.f32.mxu0 %vm1309_vm2, %v1308_v0  ;;  %v661_v2 = vld [vmem:[#allocation2 + $0xa] sm:$0x3] }
 0xd49   :  { %1231 = vmatprep.subr.mxu0 %v1308_v0 }
 0xd4a   :  { %1232 = vmatpush3.msra.mxu0 %v1379_v5 }
 0xd4b   :  { %1233 = vmatprep.subr.mxu0 %v1308_v0 }
 0xd4c   :  { %1234 = vmatpush3.msra.mxu0 %v1387_v6 }
 0xd4d   :  { %1235 = vmatprep.subr.mxu0 %v1308_v0 }
 0xd4e   :  { %1236 = vmatpush3.msra.mxu0 %v1395_v7 }
 0xe07   :  { %v730_v59 = vpop.f32.mrf.mxu0 }
 0xe08   :  { %v731_v60 = vadd.f32 %v1434_v15, %v730_v59 }
 0xe09   :  { %v1217_v61 = vpop.f32.mrf.mxu0 }
 0xe0a   :  { %742 = vrot.lane.b32.xlu1 %v731_v60, %s1310_s23  ;;  %v734_v62 = vadd.f32 %v731_v60, %v661_v2  ;;  %v1095_v61 = vld [vmem:[%s1571_s7] ss:$0 sm:$0xff] }
 0xe0c   :  { %v1090_v63 = vmul.f32 -1.442695, %v734_v62 }
 0xe0e   :  { %1286 = vpow2.f32 %v1090_v63 }
 0xe1b   :  { %v1287_v1 = vpop.eup %1286 }
 0xe1c   :  { %v738_v5 = vadd.f32 1.0, %v1287_v1 }
 0xe1e   :  { %1288 = vrcp.f32 %v738_v5 }
 0xe2b   :  { %v1289_v3 = vpop.eup %1288 }
 0xe2c   :  { %v752_v9 = vsub.f32 1.0, %v1289_v3  ;;  %v758_v11 = vmul.f32 %v1289_v3, %v655_v57 }
 0xe7c   :  { %v743_v4 = vpop.permute.xlu1 %742 }
 0xe7d   :  { %v745_v6 = vmul.f32 %v1289_v3, %v743_v4 }
 0xe7f   :  { %747 = vrot.lane.b32.xlu0 %v745_v6, %s1310_s23 }
 0xef1   :  { %v748_v0 = vpop.permute.xlu0 %747 }
 0xef2   :  { %v750_v7 = vadd.f32 %v748_v0, %v661_v2 }
 0xef4   :  { %1290 = vtanh.f32 %v750_v7 }
 0xf01   :  { %v1291_v8 = vpop.eup %1290 }
 0xf02   :  { %754 = vrot.lane.b32.xlu1 %v1291_v8, %s1311_s2 }
 0xf74   :  { %v755_v10 = vpop.permute.xlu1 %754 }
 0xf75   :  { %v757_v12 = vmul.f32 %v755_v10, %v752_v9 }
 0xf77   :  { %v759_v13 = vadd.f32 %v758_v11, %v757_v12 }
 0xf79   :  { %761 = vrot.lane.b32.xlu0 %v759_v13, %s1311_s2 }
 0xfeb   :  { %v762_v14 = vpop.permute.xlu0 %761 }
 0xfec   :  { %764 = vst.msk [vmem:[#allocation3 + $0xa] sm:$0x3] %vm243_vm5, %v762_v14  ;;  %1227 = vmatmul.mubr.msk.f32.vlgmr.msra.gmra.mxu1 %vm136_vm3, %v762_v14 }
 0xfed   :  { %1248 = vmatprep.mubr.msk.f32.mxu1 %vm136_vm3, %v973_v16 }
0x10ac   :  { %v834_v17 = vpop.f32.mrf.mxu1 }
0x10ad   :  { %v835_v18 = vadd.f32 %v1434_v15, %v834_v17 }
0x10ae   :  { %v1228_v19 = vpop.f32.mrf.mxu1 }
0x10af   :  { %846 = vrot.lane.b32.xlu1 %v835_v18, %s1310_s23  ;;  %v838_v21 = vadd.f32 %v835_v18, %v765_v20 }
0x10b1   :  { %v1092_v22 = vmul.f32 -1.442695, %v838_v21 }
0x10b3   :  { %1292 = vpow2.f32 %v1092_v22 }
0x10c0   :  { %v1293_v23 = vpop.eup %1292 }
0x10c1   :  { %v842_v24 = vadd.f32 1.0, %v1293_v23 }
0x10c3   :  { %1294 = vrcp.f32 %v842_v24 }
0x10d0   :  { %v1295_v25 = vpop.eup %1294 }
0x10d1   :  { %v856_v31 = vsub.f32 1.0, %v1295_v25  ;;  %v862_v33 = vmul.f32 %v1295_v25, %v759_v13 }
0x1121   :  { %v847_v26 = vpop.permute.xlu1 %846 }
0x1122   :  { %v849_v27 = vmul.f32 %v1295_v25, %v847_v26 }
0x1124   :  { %851 = vrot.lane.b32.xlu0 %v849_v27, %s1310_s23 }
0x1196   :  { %v852_v28 = vpop.permute.xlu0 %851 }
0x1197   :  { %v854_v29 = vadd.f32 %v852_v28, %v765_v20 }
0x1199   :  { %1296 = vtanh.f32 %v854_v29 }
0x11a6   :  { %v1297_v30 = vpop.eup %1296 }
0x11a7   :  { %858 = vrot.lane.b32.xlu1 %v1297_v30, %s1311_s2 }
0x1219   :  { %v859_v32 = vpop.permute.xlu1 %858 }
0x121a   :  { %v861_v34 = vmul.f32 %v859_v32, %v856_v31 }
0x121c   :  { %v863_v35 = vadd.f32 %v862_v33, %v861_v34 }
0x121e   :  { %865 = vrot.lane.b32.xlu0 %v863_v35, %s1311_s2 }
0x1290   :  { %v866_v36 = vpop.permute.xlu0 %865 }
0x1291   :  { %868 = vst.msk [vmem:[#allocation3 + $0xc] sm:$0x3] %vm243_vm5, %v866_v36  ;;  %1238 = vmatmul.mubr.msk.f32.vlgmr.msra.gmra.mxu0 %vm136_vm3, %v866_v36 }
0x1351   :  { %v938_v37 = vpop.f32.mrf.mxu0 }
0x1352   :  { %v939_v38 = vadd.f32 %v1434_v15, %v938_v37  ;;  %v978_v15 = vld [vmem:[%s1570_s6 + $0x18] sm:$0xff] }
0x1353   :  { %v1239_v39 = vpop.f32.mrf.mxu0  ;;  %1240 = vmatprep.subr.mxu1 %v978_v15 }
0x1354   :  { %950 = vrot.lane.b32.xlu1 %v939_v38, %s1310_s23  ;;  %v942_v41 = vadd.f32 %v939_v38, %v869_v40  ;;  %1241 = vmatpush3.msra.mxu1 %v978_v15 }
0x1355   :  { %1242 = vmatprep.subr.mxu1 %v977_v51 }
0x1356   :  { %v1094_v42 = vmul.f32 -1.442695, %v942_v41  ;;  %1243 = vmatpush3.msra.mxu1 %v977_v51 }
0x1357   :  { %1244 = vmatprep.subr.mxu1 %v976_v52 }
0x1358   :  { %1298 = vpow2.f32 %v1094_v42  ;;  %1245 = vmatpush3.msra.mxu1 %v976_v52 }
0x1359   :  { %1246 = vmatprep.subr.mxu1 %v975_v53 }
0x135a   :  { %1247 = vmatpush3.msra.mxu1 %v975_v53 }
0x1365   :  { %v1299_v43 = vpop.eup %1298 }
0x1366   :  { %v946_v44 = vadd.f32 1.0, %v1299_v43 }
0x1368   :  { %1300 = vrcp.f32 %v946_v44 }
0x1375   :  { %v1301_v45 = vpop.eup %1300 }
0x1376   :  { %v960_v54 = vsub.f32 1.0, %v1301_v45  ;;  %v966_v56 = vmul.f32 %v1301_v45, %v863_v35 }
0x13c6   :  { %v951_v46 = vpop.permute.xlu1 %950 }
0x13c7   :  { %v953_v47 = vmul.f32 %v1301_v45, %v951_v46 }
0x13c9   :  { %955 = vrot.lane.b32.xlu0 %v953_v47, %s1310_s23 }
0x143b   :  { %v956_v48 = vpop.permute.xlu0 %955 }
0x143c   :  { %v958_v49 = vadd.f32 %v956_v48, %v869_v40 }
0x143e   :  { %1302 = vtanh.f32 %v958_v49 }
0x144b   :  { %v1303_v50 = vpop.eup %1302 }
0x144c   :  { %962 = vrot.lane.b32.xlu1 %v1303_v50, %s1311_s2 }
0x14be   :  { %v963_v55 = vpop.permute.xlu1 %962 }
0x14bf   :  { %v965_v57 = vmul.f32 %v963_v55, %v960_v54 }
0x14c1   :  { %v967_v58 = vadd.f32 %v966_v56, %v965_v57 }
0x14c3   :  { %969 = vrot.lane.b32.xlu0 %v967_v58, %s1311_s2 }
0x1535   :  { %v970_v59 = vpop.permute.xlu0 %969 }
0x1536   :  { %972 = vst.msk [vmem:[#allocation3 + $0xe] sm:$0x3] %vm243_vm5, %v970_v59 }
0x153d   :  { %v974_v60 = vld [vmem:[#allocation3 + $0x8] sm:$0xff] }
0x153e   :  { %1249 = vmatmul.mubr.msk.f32.vlgmr.msra.gmra.mxu1 %vm136_vm3, %v974_v60 }
0x15fe   :  { %v1250_v2 = vpop.f32.mrf.mxu1 }
0x15ff   :  { %v1064_v62 = vadd.f32 %v1250_v2, %v1095_v61 }
0x1600   :  { %v1058_v63 = vpop.f32.mrf.mxu1 }
0x1601   :  { %1304 = vtanh.f32 %v1064_v62  ;;  %v1059_v1 = vadd.f32 %v1095_v61, %v1058_v63 }
0x1603   :  { %1306 = vtanh.f32 %v1059_v1 }
0x160e   :  { %v1305_v5 = vpop.eup %1304 }
0x160f   :  { %1070 = vst.msk [vmem:[%s1572_s8 + $0x8] sm:$0xff] %vm34_vm1, %v1305_v5 }
0x1610   :  { %v1307_v3 = vpop.eup %1306 }
0x1611   :  { %1069 = vst.msk [vmem:[%s1572_s8] sm:$0xff] %vm34_vm1, %v1307_v3 }

</bundles_post_ra>
